<compile_context>
chip_gen: v6e
topology: v6e:2x2x1
jax: 0.10.0
libtpu: 0.0.40
codegen_flags: <defaults>
</compile_context>

<pallas_src>
import jax
import jax.numpy as jnp
from jax.experimental import pallas as pl
from jax.experimental.pallas import tpu as pltpu


def _round_up(n, m):
    return ((n + m - 1) // m) * m


# ------------------------------- kernel --------------------------------------

def mod_block_kernel(x_ref, scale_ref, gate_ref, w1_ref, b1_ref, w2_ref, b2_ref,
                     o_ref, acc_ref, xb_ref):
    """Token-wise MLP block + MoD blend on the gathered (top-k) tokens.

    grid = (B, K_tiles, H_tiles).  H is streamed along the last ("arbitrary")
    axis; the second matmul is accumulated in a float32 VMEM scratch with the
    standard init/finalize pl.when pattern.  MXU operands are bfloat16, the
    accumulator / epilogue / pass-through path are float32.
    """
    ht = pl.program_id(2)

    @pl.when(ht == 0)
    def _init():
        acc_ref[...] = jnp.zeros_like(acc_ref)
        # bf16 copy of the token tile for the MXU, cast once per (b, K-tile).
        xb_ref[...] = x_ref[0].astype(xb_ref.dtype)

    # (TK, D) @ (D, TH) -> (TK, TH), f32 accumulation on the MXU
    h = jnp.dot(xb_ref[...], w1_ref[...], preferred_element_type=jnp.float32)
    h = h + b1_ref[...]                                     # f32 epilogue
    # GELU (tanh approximation -- native tanh EUP path on all TPU generations).
    # TODO(synk): PyTorch nn.GELU defaults to exact erf; the reference block is
    # an abstract transformer block, so the tanh approximation is acceptable.
    h = jax.nn.gelu(h)
    # (TK, TH) @ (TH, D) -> accumulate the H-reduction in f32 scratch
    acc_ref[...] += jnp.dot(h.astype(jnp.bfloat16), w2_ref[...],
                            preferred_element_type=jnp.float32)

    @pl.when(ht == pl.num_programs(2) - 1)
    def _finalize():
        y = acc_ref[...] + b2_ref[...]                      # (TK, D) f32
        # MoD blend: selected tokens -> block output * router weight,
        # unselected (threshold) tokens -> exact f32 pass-through.
        out = jnp.where(gate_ref[0] != 0.0, y * scale_ref[0], x_ref[0])
        o_ref[0] = out.astype(o_ref.dtype)                  # lane-dense store


# ------------------------------- wrapper --------------------------------------

def mod_forward(x, params, capacity=0.5):
    """MoD.forward (inference).  x: (B, S, D) float32.  Returns (out,)."""
    b, s, d = x.shape
    h_dim = params["w1"].shape[1]

    # ---- 1. router weights: tiny (B,S,D)@(D,1) GEMV in float32 (plain XLA).
    x_f32 = x.astype(jnp.float32)
    weights = (x_f32 @ params["wr"])[..., 0] + params["br"][0, 0]     # (B, S)

    # ---- 2. per-batch top-k threshold + selection mask (matches PyTorch:
    #         strict '>' when k > 1, '>=' when k == 1).
    k = max(1, int(capacity * s))
    top_vals, top_idx = jax.lax.top_k(weights, k)                     # (B, k)
    threshold = top_vals[:, -1]                                       # (B,)
    if k > 1:
        mask = weights > threshold[:, None]
    else:
        mask = weights >= threshold[:, None]
    # Every token with weight strictly above the threshold is contained in
    # top_idx, so gathering the top-k rows covers every selected token.
    # (k == 1 with exact float ties: PyTorch would process all tied tokens, we
    #  process only the first -- a measure-zero difference.)

    # ---- 3. tile sizes / padding: D kept whole on the lane axis, K and H
    #         padded to tile multiples so every block is full-sized.
    tile_k = min(512, _round_up(k, 8))
    k_pad = _round_up(k, tile_k)
    tile_h = min(512, _round_up(h_dim, 128))
    h_pad = _round_up(h_dim, tile_h)

    # ---- 4. gather only the selected (top-k) tokens.
    # Pad indices with 0.  Padded entries carry token 0's real gate / weight,
    # so every duplicate write to row 0 in the final scatter has an identical
    # value (deterministic), whether token 0 is selected or not.
    idx = jnp.pad(top_idx, ((0, 0), (0, k_pad - k)))
    x_sel = jnp.take_along_axis(x_f32, idx[..., None], axis=1)        # (B,Kp,D)
    w_sel = jnp.take_along_axis(weights, idx, axis=1)[..., None]      # (B,Kp,1)
    sel_f = jnp.take_along_axis(mask.astype(jnp.float32), idx,
                                axis=1)[..., None]                    # (B,Kp,1)

    # ---- 5. block MLP + blend on the selected tokens (Pallas kernel).
    # Zero-padded hidden units contribute exactly 0 (gelu(0) = 0).
    w1 = jnp.pad(params["w1"], ((0, 0), (0, h_pad - h_dim))).astype(jnp.bfloat16)
    b1 = jnp.pad(params["b1"], ((0, 0), (0, h_pad - h_dim))).astype(jnp.float32)
    w2 = jnp.pad(params["w2"], ((0, h_pad - h_dim), (0, 0))).astype(jnp.bfloat16)
    b2 = params["b2"].astype(jnp.float32)

    grid = (b, k_pad // tile_k, h_pad // tile_h)

    # Explicit VMEM budget: double-buffered tiles + scratch, clamped so it
    # fits every generation (v7x has only 64 MiB physical VMEM).
    vmem_est = 2 * (tile_k * d * 4          # x tile (f32)
                    + 2 * tile_k * 4        # scale + gate tiles
                    + d * tile_h * 2        # w1 tile (bf16)
                    + tile_h * 4            # b1 tile
                    + tile_h * d * 2        # w2 tile (bf16)
                    + d * 4                 # b2 tile
                    + tile_k * d * 4)       # out tile (f32)
    vmem_est += tile_k * d * (4 + 2)        # f32 accumulator + bf16 x scratch
    vmem_limit = int(min(max(2 * vmem_est, 16 * 2**20), 48 * 2**20))

    cost = pl.CostEstimate(
        flops=4 * b * k_pad * d * h_pad,
        transcendentals=b * k_pad * h_pad,
        bytes_accessed=(b * k_pad * d * (4 + 4)      # x in (f32) + out (f32)
                        + b * k_pad * 4 * 2          # scale + gate
                        + d * h_pad * 2 + h_pad * d * 2
                        + h_pad * 4 + d * 4),
    )

    y_blend = pl.pallas_call(
        mod_block_kernel,
        out_shape=jax.ShapeDtypeStruct((b, k_pad, d), jnp.float32),
        grid=grid,
        in_specs=[
            pl.BlockSpec((1, tile_k, d), lambda bi, ki, hi: (bi, ki, 0)),  # x_sel
            pl.BlockSpec((1, tile_k, 1), lambda bi, ki, hi: (bi, ki, 0)),  # w_sel
            pl.BlockSpec((1, tile_k, 1), lambda bi, ki, hi: (bi, ki, 0)),  # sel_f
            pl.BlockSpec((d, tile_h), lambda bi, ki, hi: (0, hi)),         # w1
            pl.BlockSpec((1, tile_h), lambda bi, ki, hi: (0, hi)),         # b1
            pl.BlockSpec((tile_h, d), lambda bi, ki, hi: (hi, 0)),         # w2
            pl.BlockSpec((1, d), lambda bi, ki, hi: (0, 0)),               # b2
        ],
        out_specs=pl.BlockSpec((1, tile_k, d), lambda bi, ki, hi: (bi, ki, 0)),
        scratch_shapes=[pltpu.VMEM((tile_k, d), jnp.float32),
                        pltpu.VMEM((tile_k, d), jnp.bfloat16)],
        compiler_params=pltpu.CompilerParams(
            dimension_semantics=("parallel", "parallel", "arbitrary"),
            vmem_limit_bytes=vmem_limit),
        cost_estimate=cost,
    )(x_sel, w_sel, sel_f, w1, b1, w2, b2)

    # ---- 6. scatter the (already blended) top-k rows back into x.
    # Duplicate padded indices write identical values -> deterministic.
    batch_ix = jnp.arange(b)[:, None]
    out = x_f32.at[batch_ix, idx].set(y_blend)
    return (out.astype(x.dtype),)


def mod_reference(x, params, capacity=0.5):
    """Dense pure-JAX reference: block on ALL tokens, then mask-blend."""
    b, s, d = x.shape
    xf = x.astype(jnp.float32)
    w = (xf @ params["wr"])[..., 0] + params["br"][0, 0]
    k = max(1, int(capacity * s))
    thr = jax.lax.top_k(w, k)[0][:, -1]
    mask = (w > thr[:, None]) if k > 1 else (w >= thr[:, None])
    h = jnp.dot(xf.astype(jnp.bfloat16), params["w1"].astype(jnp.bfloat16),
                preferred_element_type=jnp.float32) + params["b1"]
    h = jax.nn.gelu(h)
    y = jnp.dot(h.astype(jnp.bfloat16), params["w2"].astype(jnp.bfloat16),
                preferred_element_type=jnp.float32) + params["b2"]
    return jnp.where(mask[..., None], y * w[..., None], xf)


def init_params(key, d, h):
    """Deterministic synthetic parameters (router + token-wise MLP block)."""
    k0, k1, k2 = jax.random.split(key, 3)
    return {
        "wr": jax.random.normal(k0, (d, 1), jnp.float32) * 0.1,   # router weight
        "br": jnp.zeros((1, 1), jnp.float32),                     # router bias
        "w1": jax.random.normal(k1, (d, h), jnp.float32) * 0.05,  # block MLP
        "b1": jnp.zeros((1, h), jnp.float32),
        "w2": jax.random.normal(k2, (h, d), jnp.float32) * 0.05,
        "b2": jnp.zeros((1, d), jnp.float32),
    }


if __name__ == "__main__":
    B, S, D = 2, 128, 128      # small but MXU/lane-aligned (multiples of 128)
    H = 4 * D                  # 512

    key = jax.random.PRNGKey(0)
    kx, kp = jax.random.split(key)
    x = jax.random.normal(kx, (B, S, D), jnp.float32)
    params = init_params(kp, D, H)

    run = jax.jit(lambda xx, pp: (mod_forward(xx, pp, capacity=0.5)[0],
                                  mod_reference(xx, pp, capacity=0.5)))
    out, ref = run(x, params)
    out = jax.block_until_ready(out)

    assert out.shape == (B, S, D) and out.dtype == jnp.float32
    err = float(jnp.max(jnp.abs(out - ref)))
    assert err < 5e-2, f"kernel/reference mismatch: max |diff| = {err}"
    print("KERNEL_OK")
</pallas_src>

<mosaic_0001>
module attributes {stable_mosaic.version = 11 : i64} {
  func.func @mod_block_kernel(%arg0: i32, %arg1: i32, %arg2: i32, %arg3: memref<1x64x128xf32, #tpu.memory_space<vmem>>, %arg4: memref<1x64x1xf32, #tpu.memory_space<vmem>>, %arg5: memref<1x64x1xf32, #tpu.memory_space<vmem>>, %arg6: memref<128x512xbf16, #tpu.memory_space<vmem>>, %arg7: memref<1x512xf32, #tpu.memory_space<vmem>>, %arg8: memref<512x128xbf16, #tpu.memory_space<vmem>>, %arg9: memref<1x128xf32, #tpu.memory_space<vmem>>, %arg10: memref<1x64x128xf32, #tpu.memory_space<vmem>>, %arg11: memref<64x128xf32, #tpu.memory_space<vmem>>, %arg12: memref<64x128xbf16, #tpu.memory_space<vmem>>) attributes {dimension_semantics = [#tpu.dimension_semantics<parallel>, #tpu.dimension_semantics<parallel>, #tpu.dimension_semantics<arbitrary>], iteration_bounds = array<i64: 2, 1, 1>, scalar_prefetch = 0 : i64, scratch_operands = 2 : i64, tpu.core_type = #tpu.core_type<tc>, window_params = [{transform_indices = @transform_0, window_bounds = array<i64: 1, 64, 128>}, {transform_indices = @transform_1, window_bounds = array<i64: 1, 64, 1>}, {transform_indices = @transform_2, window_bounds = array<i64: 1, 64, 1>}, {transform_indices = @transform_3, window_bounds = array<i64: 128, 512>}, {transform_indices = @transform_4, window_bounds = array<i64: 1, 512>}, {transform_indices = @transform_5, window_bounds = array<i64: 512, 128>}, {pipeline_mode = #tpu.pipeline_mode<synchronous>, transform_indices = @transform_6, window_bounds = array<i64: 1, 128>}, {transform_indices = @transform_7, window_bounds = array<i64: 1, 64, 128>}]} {
    %c0_i32 = arith.constant 0 : i32
    %0 = arith.cmpi eq, %arg2, %c0_i32 : i32
    %1 = arith.extui %0 : i1 to i32
    %c0_i32_0 = arith.constant 0 : i32
    %2 = arith.cmpi ne, %1, %c0_i32_0 : i32
    scf.if %2 {
      %cst_19 = arith.constant 0.000000e+00 : f32
      %31 = vector.broadcast %cst_19 : f32 to vector<64x128xf32>
      %c0_20 = arith.constant 0 : index
      %c0_21 = arith.constant 0 : index
      %32 = vector.load %arg11[%c0_20, %c0_21] : memref<64x128xf32, #tpu.memory_space<vmem>>, vector<64x128xf32>
      tpu.vector_store %arg11[%c0_20, %c0_21], %31 {strides = array<i32>} : memref<64x128xf32, #tpu.memory_space<vmem>>, vector<64x128xf32>,
      %c0_22 = arith.constant 0 : index
      %c0_23 = arith.constant 0 : index
      %c0_24 = arith.constant 0 : index
      %33 = vector.load %arg3[%c0_22, %c0_23, %c0_24] : memref<1x64x128xf32, #tpu.memory_space<vmem>>, vector<1x64x128xf32>
      %34 = vector.shape_cast %33 : vector<1x64x128xf32> to vector<64x128xf32>
      %35 = arith.truncf %34 : vector<64x128xf32> to vector<64x128xbf16>
      %c0_25 = arith.constant 0 : index
      %c0_26 = arith.constant 0 : index
      %36 = vector.load %arg12[%c0_25, %c0_26] : memref<64x128xbf16, #tpu.memory_space<vmem>>, vector<64x128xbf16>
      tpu.vector_store %arg12[%c0_25, %c0_26], %35 {strides = array<i32>} : memref<64x128xbf16, #tpu.memory_space<vmem>>, vector<64x128xbf16>,
    } else {
    }
    %c0 = arith.constant 0 : index
    %c0_1 = arith.constant 0 : index
    %3 = vector.load %arg12[%c0, %c0_1] : memref<64x128xbf16, #tpu.memory_space<vmem>>, vector<64x128xbf16>
    %c0_2 = arith.constant 0 : index
    %c0_3 = arith.constant 0 : index
    %4 = vector.load %arg6[%c0_2, %c0_3] : memref<128x512xbf16, #tpu.memory_space<vmem>>, vector<128x512xbf16>
    %cst = arith.constant dense<0.000000e+00> : vector<64x512xf32>
    %5 = tpu.matmul %3, %4, %cst {dimension_numbers = #tpu.dot_dimension_numbers<[1], [0], [0], [1], [0, 0, 1, 1], [], []>} : vector<64x128xbf16>, vector<128x512xbf16>, vector<64x512xf32> -> vector<64x512xf32>
    %c0_4 = arith.constant 0 : index
    %c0_5 = arith.constant 0 : index
    %6 = vector.load %arg7[%c0_4, %c0_5] : memref<1x512xf32, #tpu.memory_space<vmem>>, vector<1x512xf32>
    %7 = vector.broadcast %6 : vector<1x512xf32> to vector<64x512xf32>
    %8 = arith.addf %5, %7 : vector<64x512xf32>
    %9 = arith.mulf %8, %8 : vector<64x512xf32>
    %10 = arith.mulf %8, %9 : vector<64x512xf32>
    %cst_6 = arith.constant 4.471500e-02 : f32
    %11 = vector.broadcast %cst_6 : f32 to vector<64x512xf32>
    %12 = arith.mulf %11, %10 : vector<64x512xf32>
    %13 = arith.addf %8, %12 : vector<64x512xf32>
    %cst_7 = arith.constant 0.797884583 : f32
    %14 = vector.broadcast %cst_7 : f32 to vector<64x512xf32>
    %15 = arith.mulf %14, %13 : vector<64x512xf32>
    %16 = math.tanh %15 : vector<64x512xf32>
    %cst_8 = arith.constant 1.000000e+00 : f32
    %17 = vector.broadcast %cst_8 : f32 to vector<64x512xf32>
    %18 = arith.addf %17, %16 : vector<64x512xf32>
    %cst_9 = arith.constant 5.000000e-01 : f32
    %19 = vector.broadcast %cst_9 : f32 to vector<64x512xf32>
    %20 = arith.mulf %19, %18 : vector<64x512xf32>
    %21 = arith.mulf %8, %20 : vector<64x512xf32>
    %c0_10 = arith.constant 0 : index
    %c0_11 = arith.constant 0 : index
    %22 = vector.load %arg11[%c0_10, %c0_11] : memref<64x128xf32, #tpu.memory_space<vmem>>, vector<64x128xf32>
    %23 = arith.truncf %21 : vector<64x512xf32> to vector<64x512xbf16>
    %c0_12 = arith.constant 0 : index
    %c0_13 = arith.constant 0 : index
    %24 = vector.load %arg8[%c0_12, %c0_13] : memref<512x128xbf16, #tpu.memory_space<vmem>>, vector<512x128xbf16>
    %cst_14 = arith.constant dense<0.000000e+00> : vector<64x128xf32>
    %25 = tpu.matmul %23, %24, %cst_14 {dimension_numbers = #tpu.dot_dimension_numbers<[1], [0], [0], [1], [0, 0, 1, 1], [], []>} : vector<64x512xbf16>, vector<512x128xbf16>, vector<64x128xf32> -> vector<64x128xf32>
    %26 = arith.addf %22, %25 : vector<64x128xf32>
    %c0_15 = arith.constant 0 : index
    %c0_16 = arith.constant 0 : index
    %27 = vector.load %arg11[%c0_15, %c0_16] : memref<64x128xf32, #tpu.memory_space<vmem>>, vector<64x128xf32>
    tpu.vector_store %arg11[%c0_15, %c0_16], %26 {strides = array<i32>} : memref<64x128xf32, #tpu.memory_space<vmem>>, vector<64x128xf32>,
    %c0_i32_17 = arith.constant 0 : i32
    %28 = arith.cmpi eq, %arg2, %c0_i32_17 : i32
    %29 = arith.extui %28 : i1 to i32
    %c0_i32_18 = arith.constant 0 : i32
    %30 = arith.cmpi ne, %29, %c0_i32_18 : i32
    scf.if %30 {
      %c0_19 = arith.constant 0 : index
      %c0_20 = arith.constant 0 : index
      %31 = vector.load %arg11[%c0_19, %c0_20] : memref<64x128xf32, #tpu.memory_space<vmem>>, vector<64x128xf32>
      %c0_21 = arith.constant 0 : index
      %c0_22 = arith.constant 0 : index
      %32 = vector.load %arg9[%c0_21, %c0_22] : memref<1x128xf32, #tpu.memory_space<vmem>>, vector<1x128xf32>
      %33 = vector.broadcast %32 : vector<1x128xf32> to vector<64x128xf32>
      %34 = arith.addf %31, %33 : vector<64x128xf32>
      %c0_23 = arith.constant 0 : index
      %c0_24 = arith.constant 0 : index
      %c0_25 = arith.constant 0 : index
      %35 = vector.load %arg5[%c0_23, %c0_24, %c0_25] : memref<1x64x1xf32, #tpu.memory_space<vmem>>, vector<1x64x1xf32>
      %36 = vector.shape_cast %35 : vector<1x64x1xf32> to vector<64x1xf32>
      %cst_26 = arith.constant 0.000000e+00 : f32
      %37 = vector.broadcast %cst_26 : f32 to vector<64x1xf32>
      %38 = arith.cmpf one, %36, %37 : vector<64x1xf32>
      %c0_27 = arith.constant 0 : index
      %c0_28 = arith.constant 0 : index
      %c0_29 = arith.constant 0 : index
      %39 = vector.load %arg4[%c0_27, %c0_28, %c0_29] : memref<1x64x1xf32, #tpu.memory_space<vmem>>, vector<1x64x1xf32>
      %40 = vector.shape_cast %39 : vector<1x64x1xf32> to vector<64x1xf32>
      %41 = vector.broadcast %40 : vector<64x1xf32> to vector<64x128xf32>
      %42 = arith.mulf %34, %41 : vector<64x128xf32>
      %c0_30 = arith.constant 0 : index
      %c0_31 = arith.constant 0 : index
      %c0_32 = arith.constant 0 : index
      %43 = vector.load %arg3[%c0_30, %c0_31, %c0_32] : memref<1x64x128xf32, #tpu.memory_space<vmem>>, vector<1x64x128xf32>
      %44 = vector.shape_cast %43 : vector<1x64x128xf32> to vector<64x128xf32>
      %45 = vector.shape_cast %38 : vector<64x1xi1> to vector<64x1xi1>
      %46 = vector.broadcast %45 : vector<64x1xi1> to vector<64x128xi1>
      %47 = arith.select %46, %42, %44 : vector<64x128xi1>, vector<64x128xf32>
      %c0_33 = arith.constant 0 : index
      %c0_34 = arith.constant 0 : index
      %c0_35 = arith.constant 0 : index
      %48 = vector.load %arg10[%c0_33, %c0_34, %c0_35] : memref<1x64x128xf32, #tpu.memory_space<vmem>>, vector<1x64x128xf32>
      %49 = vector.shape_cast %48 : vector<1x64x128xf32> to vector<64x128xf32>
      %50 = vector.shape_cast %47 : vector<64x128xf32> to vector<1x64x128xf32>
      tpu.vector_store %arg10[%c0_33, %c0_34, %c0_35], %50 {strides = array<i32>} : memref<1x64x128xf32, #tpu.memory_space<vmem>>, vector<1x64x128xf32>,
    } else {
    }
    return
  }
  func.func @transform_0(%arg0: i32, %arg1: i32, %arg2: i32) -> (i32, i32, i32) {
    %c0_i32 = arith.constant 0 : i32
    %c0_i32_0 = arith.constant 0 : i32
    return %arg0, %arg1, %c0_i32 : i32, i32, i32
  }
  func.func @transform_1(%arg0: i32, %arg1: i32, %arg2: i32) -> (i32, i32, i32) {
    %c0_i32 = arith.constant 0 : i32
    %c0_i32_0 = arith.constant 0 : i32
    return %arg0, %arg1, %c0_i32 : i32, i32, i32
  }
  func.func @transform_2(%arg0: i32, %arg1: i32, %arg2: i32) -> (i32, i32, i32) {
    %c0_i32 = arith.constant 0 : i32
    %c0_i32_0 = arith.constant 0 : i32
    return %arg0, %arg1, %c0_i32 : i32, i32, i32
  }
  func.func @transform_3(%arg0: i32, %arg1: i32, %arg2: i32) -> (i32, i32) {
    %c0_i32 = arith.constant 0 : i32
    %c0_i32_0 = arith.constant 0 : i32
    return %c0_i32, %arg2 : i32, i32
  }
  func.func @transform_4(%arg0: i32, %arg1: i32, %arg2: i32) -> (i32, i32) {
    %c0_i32 = arith.constant 0 : i32
    %c0_i32_0 = arith.constant 0 : i32
    return %c0_i32, %arg2 : i32, i32
  }
  func.func @transform_5(%arg0: i32, %arg1: i32, %arg2: i32) -> (i32, i32) {
    %c0_i32 = arith.constant 0 : i32
    %c0_i32_0 = arith.constant 0 : i32
    return %arg2, %c0_i32 : i32, i32
  }
  func.func @transform_6(%arg0: i32, %arg1: i32, %arg2: i32) -> (i32, i32) {
    %c0_i32 = arith.constant 0 : i32
    %c0_i32_0 = arith.constant 0 : i32
    %c0_i32_1 = arith.constant 0 : i32
    return %c0_i32, %c0_i32_0 : i32, i32
  }
  func.func @transform_7(%arg0: i32, %arg1: i32, %arg2: i32) -> (i32, i32, i32) {
    %c0_i32 = arith.constant 0 : i32
    %c0_i32_0 = arith.constant 0 : i32
    return %arg0, %arg1, %c0_i32 : i32, i32, i32
  }
}

</mosaic_0001>

<bundles_post_ra>
// kernel: _lambda_.1
= control target key start
LH: loop header
LB: loop body
LE: loop exit
PB: predicated region body
PF: predicated region fallthrough
CT: control target
= control target key end

     0   :  { %s2407_s24 = smov 0   ;;  %s2409_s25 = smov 0   ;;  %s3064_s0 = inlined_call_operand.vmem [shape: f32[2,64,128], index: 0, kind: input, shape index: {}]   ;;  %s3065_s1 = inlined_call_operand.vmem [shape: f32[2,64,1], index: 1, kind: input, shape index: {}]   ;;  %s3066_s2 = inlined_call_operand.vmem [shape: f32[2,64,1], index: 2, kind: input, shape index: {}]   ;;  %s3067_s3 = inlined_call_operand.vmem [shape: bf16[128,512], index: 3, kind: input, shape index: {}]   ;;  %s3068_s4 = inlined_call_operand.vmem [shape: f32[1,512], index: 4, kind: input, shape index: {}]   ;;  %s3069_s5 = inlined_call_operand.vmem [shape: bf16[512,128], index: 5, kind: input, shape index: {}]   ;;  %s3070_s6 = inlined_call_operand.vmem [shape: f32[1,128], index: 6, kind: input, shape index: {}]   ;;  %s3071_s7 = inlined_call_operand.vmem [shape: f32[2,64,128], index: 7, kind: output, shape index: {}]  }
   0x1   :  { %s2411_s26 = smov 0  }
   0x2 LB: > { %s36_s27 = sadd.s32 1, %s2360_s25  ;;  %p1964_p0 = scmp.ge.s32.totalorder %s2364_s26, 1  ;;  %s2364_s26 = sphi %s2411_s26, %s17_s26   ;;  %s2360_s25 = sphi %s2409_s25, %s3081_s25   ;;  %s2356_s24 = sphi %s2407_s24, %s3080_s24  }
   0x3   : > { %p38_p1 = scmp.ge.s32.totalorder %s36_s27, 2  ;;  %p331_p2 = scmp.lt.s32.totalorder %s2364_s26, 3 }
   0x5   : > { %s3083_s27 = smov (%p38_p1, %s36_s27), 0  ;;  %p332_p3 = pnand %p1964_p0, %p331_p2 }
   0x7   : > { %335 = sbr.rel (%p332_p3) target bundleno = 546 (0x222), region = 48 }
   0xc   : > { %v2194_v0 = vld [vmem:[%s3067_s3 + $0xe4] ss:$16 sps:$4 sm:$0xff]   ;;  %v2196_v1 = vld [vmem:[%s3067_s3 + $0xec] ss:$16 sps:$4 sm:$0xff]   ;;  %v2366_v2 = vmov 0   ;;  %p404_p4 = scmp.lt.s32.totalorder %s2356_s24, 1 }
   0xd   : > { %799 = vmatprep.mubr.bf16.mxu0 %v2366_v2  ;;  %872 = vmatprep.mubr.bf16.mxu1 %v2366_v2  ;;  %v2198_v3 = vld [vmem:[%s3067_s3 + $0xe0] ss:$16 sps:$4 sm:$0xff]   ;;  %v2199_v4 = vld [vmem:[%s3067_s3 + $0xe8] ss:$16 sps:$4 sm:$0xff]   ;;  %v2200_v5 = vld [vmem:[%s3067_s3 + $0xc4] ss:$16 sps:$4 sm:$0xff]  }
   0xe   : > { %767 = vmatprep.subr.bf16.mxu0 %v2194_v0  ;;  %2193 = vset.pattern.permute.xlu1 %v2366_v2  ;;  %v2202_v6 = vld [vmem:[%s3067_s3 + $0xcc] ss:$16 sps:$4 sm:$0xff]   ;;  %v2204_v7 = vld [vmem:[%s3067_s3 + $0xc0] ss:$16 sps:$4 sm:$0xff]   ;;  %v2205_v8 = vld [vmem:[%s3067_s3 + $0xc8] ss:$16 sps:$4 sm:$0xff]  }
   0xf   : > { %840 = vmatprep.subr.bf16.mxu1 %v2196_v1  ;;  %2192 = vset.pattern.permute.xlu0 %v2366_v2  ;;  %v2206_v9 = vld [vmem:[%s3067_s3 + $0xa4] ss:$16 sps:$4 sm:$0xff]   ;;  %v2208_v10 = vld [vmem:[%s3067_s3 + $0xac] ss:$16 sps:$4 sm:$0xff]   ;;  %v2210_v11 = vld [vmem:[%s3067_s3 + $0xa0] ss:$16 sps:$4 sm:$0xff]  }
  0x10   : > { %768 = vmatpush1.bf16.msra.mxu0 %v2198_v3  ;;  %841 = vmatpush1.bf16.msra.mxu1 %v2199_v4  ;;  %v2211_v12 = vld [vmem:[%s3067_s3 + $0xa8] ss:$16 sps:$4 sm:$0xff]   ;;  %v2212_v13 = vld [vmem:[%s3067_s3 + $0x84] ss:$16 sps:$4 sm:$0xff]   ;;  %v2214_v14 = vld [vmem:[%s3067_s3 + $0x8c] ss:$16 sps:$4 sm:$0xff]  }
  0x11   : > { %769 = vmatprep.subr.bf16.mxu0 %v2200_v5  ;;  %842 = vmatprep.subr.bf16.mxu1 %v2202_v6  ;;  %v2216_v15 = vld [vmem:[%s3067_s3 + $0x80] ss:$16 sps:$4 sm:$0xff]   ;;  %s3085_s24 = smov (!%p404_p4, %s2356_s24), 1  ;;  %v2217_v16 = vld [vmem:[%s3067_s3 + $0x88] ss:$16 sps:$4 sm:$0xff]  }
  0x12   : > { %v2218_v17 = vld [vmem:[%s3067_s3 + $0x64] ss:$16 sps:$4 sm:$0xff]   ;;  %v2220_v18 = vld [vmem:[%s3067_s3 + $0x6c] ss:$16 sps:$4 sm:$0xff]   ;;  %v2222_v19 = vld [vmem:[%s3067_s3 + $0x60] ss:$16 sps:$4 sm:$0xff]  }
  0x13   : > { %v2223_v20 = vld [vmem:[%s3067_s3 + $0x68] ss:$16 sps:$4 sm:$0xff]   ;;  %s2493_s30 = sshll.u32 %s3085_s24, 6  ;;  %v2224_v21 = vld [vmem:[%s3067_s3 + $0x44] ss:$16 sps:$4 sm:$0xff]  }
  0x14   : > { %770 = vmatpush1.bf16.msra.mxu0 %v2204_v7  ;;  %843 = vmatpush1.bf16.msra.mxu1 %v2205_v8  ;;  %v2226_v22 = vld [vmem:[%s3067_s3 + $0x4c] ss:$16 sps:$4 sm:$0xff]   ;;  %s2505_s14 = scalar_lea.vmem %s3064_s0, %s2493_s30  ;;  %v2228_v23 = vld [vmem:[%s3067_s3 + $0x40] ss:$16 sps:$4 sm:$0xff]   ;;  %v2229_v24 = vld [vmem:[%s3067_s3 + $0x48] ss:$16 sps:$4 sm:$0xff]   ;;  %s421_s10 = scalar_lea.vmem %s3065_s1, %s2493_s30 }
  0x15   : > { %771 = vmatprep.subr.bf16.mxu0 %v2206_v9  ;;  %844 = vmatprep.subr.bf16.mxu1 %v2208_v10  ;;  %v2230_v25 = vld [vmem:[%s3067_s3 + $0x24] ss:$16 sps:$4 sm:$0xff]   ;;  %v2232_v26 = vld [vmem:[%s3067_s3 + $0x2c] ss:$16 sps:$4 sm:$0xff]   ;;  %v2234_v29 = vld [vmem:[%s3067_s3 + $0x20] ss:$16 sps:$4 sm:$0xff]   ;;  %s431_s13 = scalar_lea.vmem %s3066_s2, %s2493_s30  ;;  %s3026_s20 = scalar_lea.vmem %s3071_s7, %s2493_s30 }
  0x16   : > { %v473_v27 = vld [vmem:[%s2505_s14] sm:$0xff]  ;;  %v474_v28 = vld [vmem:[%s2505_s14 + $0x8] sm:$0xff]  ;;  %v475_v32 = vld [vmem:[%s2505_s14 + $0x10] sm:$0xff] }
  0x17   : > { %v2235_v30 = vld [vmem:[%s3067_s3 + $0x28] ss:$16 sps:$4 sm:$0xff]   ;;  %v2067_v31 = vpack.c.bf16 %v474_v28, %v473_v27  ;;  %v477_v34 = vld [vmem:[%s2505_s14 + $0x20] sm:$0xff]  ;;  %v479_v38 = vld [vmem:[%s2505_s14 + $0x30] sm:$0xff] }
  0x18   : > { %772 = vmatpush1.bf16.msra.mxu0 %v2210_v11  ;;  %845 = vmatpush1.bf16.msra.mxu1 %v2211_v12  ;;  %v476_v33 = vld [vmem:[%s2505_s14 + $0x18] sm:$0xff]  ;;  %v2236_v35 = vld [vmem:[%s3067_s3 + $0x4] ss:$16 sps:$4 sm:$0xff]   ;;  %v478_v37 = vld [vmem:[%s2505_s14 + $0x28] sm:$0xff] }
  0x19   : > { %773 = vmatprep.subr.bf16.mxu0 %v2212_v13  ;;  %846 = vmatprep.subr.bf16.mxu1 %v2214_v14  ;;  %v2072_v36 = vpack.c.bf16 %v476_v33, %v475_v32  ;;  %v480_v39 = vld [vmem:[%s2505_s14 + $0x38] sm:$0xff]  ;;  %2068 = vst [vmem:[#allocation3] sm:$0xff] %v2067_v31   ;;  %v2077_v41 = vpack.c.bf16 %v478_v37, %v477_v34  ;;  %v2240_v43 = vld [vmem:[%s3067_s3] ss:$16 sps:$4 sm:$0xff]   ;;  %v2254_v57 = vld [vmem:[%s3069_s5 + $0x68] sm:$0xff]   ;;  %v563_v32 = vlaneseq }
  0x1a   : > { %v2238_v40 = vld [vmem:[%s3067_s3 + $0xc] ss:$16 sps:$4 sm:$0xff]   ;;  %v2082_v42 = vpack.c.bf16 %v480_v39, %v479_v38  ;;  %v2241_v44 = vld [vmem:[%s3067_s3 + $0x8] ss:$16 sps:$4 sm:$0xff]   ;;  %v2250_v53 = vld [vmem:[%s3069_s5 + $0x70] sm:$0xff]  }
  0x1b   : > { %2084 = vst [vmem:[#allocation3 + $0x8] sm:$0xff] %v2072_v36   ;;  %2085 = vst [vmem:[#allocation3 + $0x10] sm:$0xff] %v2077_v41   ;;  %v2246_v49 = vld [vmem:[%s3069_s5 + $0x78] sm:$0xff]   ;;  %v2251_v54 = vld [vmem:[%s3069_s5 + $0xf0] sm:$0xff]   ;;  %v564_v37 = vshrl.u32 %v563_v32, 7 }
  0x1c   : > { %774 = vmatpush1.bf16.msra.mxu0 %v2216_v15  ;;  %847 = vmatpush1.bf16.msra.mxu1 %v2217_v16  ;;  %2086 = vst [vmem:[#allocation3 + $0x18] sm:$0xff] %v2082_v42   ;;  %v2247_v50 = vld [vmem:[%s3069_s5 + $0xf8] sm:$0xff]   ;;  %v2252_v55 = vld [vmem:[%s3069_s5 + $0x30] sm:$0xff]   ;;  %v2255_v58 = vld [vmem:[%s3069_s5 + $0xe8] sm:$0xff]  }
  0x1d   : > { %775 = vmatprep.subr.bf16.mxu0 %v2218_v17  ;;  %848 = vmatprep.subr.bf16.mxu1 %v2220_v18  ;;  %v2248_v51 = vld [vmem:[%s3069_s5 + $0x38] sm:$0xff]   ;;  %v2253_v56 = vld [vmem:[%s3069_s5 + $0xb0] sm:$0xff]   ;;  %v2256_v59 = vld [vmem:[%s3069_s5 + $0x28] sm:$0xff]   ;;  %v565_v42 = vsub.s32 0, %v564_v37 }
  0x1e   : > { %v2249_v52 = vld [vmem:[%s3069_s5 + $0xb8] sm:$0xff]   ;;  %v2257_v60 = vld [vmem:[%s3069_s5 + $0xa8] sm:$0xff]   ;;  %v2258_v61 = vld [vmem:[%s3069_s5 + $0x60] sm:$0xff]  }
  0x1f   : > { %v2259_v62 = vld [vmem:[%s3069_s5 + $0xe0] sm:$0xff]   ;;  %v2262_v1 = vld [vmem:[%s3069_s5 + $0x58] sm:$0xff]   ;;  %v2266_v6 = vld [vmem:[%s3069_s5 + $0x50] sm:$0xff]  }
  0x20   : > { %776 = vmatpush1.bf16.msra.mxu0 %v2222_v19  ;;  %849 = vmatpush1.bf16.msra.mxu1 %v2223_v20  ;;  %v2242_v45 = vld [vmem:[#allocation3] sm:$0xff]   ;;  %v2260_v63 = vld [vmem:[%s3069_s5 + $0x20] sm:$0xff]   ;;  %v2263_v3 = vld [vmem:[%s3069_s5 + $0xd8] sm:$0xff]  }
  0x21   : > { %777 = vmatprep.subr.bf16.mxu0 %v2224_v21  ;;  %850 = vmatprep.subr.bf16.mxu1 %v2226_v22  ;;  %v2261_v0 = vld [vmem:[%s3069_s5 + $0xa0] sm:$0xff]   ;;  %v2264_v4 = vld [vmem:[%s3069_s5 + $0x18] sm:$0xff]   ;;  %v2267_v7 = vld [vmem:[%s3069_s5 + $0xd0] sm:$0xff]  }
  0x22   : > { %v2243_v46 = vld [vmem:[#allocation3 + $0x8] sm:$0xff]   ;;  %v2244_v47 = vld [vmem:[#allocation3 + $0x10] sm:$0xff]   ;;  %v2270_v10 = vld [vmem:[%s3069_s5 + $0x48] sm:$0xff]  }
  0x23   : > { %v2245_v48 = vld [vmem:[#allocation3 + $0x18] sm:$0xff]   ;;  %v2265_v5 = vld [vmem:[%s3069_s5 + $0x98] sm:$0xff]   ;;  %v2268_v8 = vld [vmem:[%s3069_s5 + $0x10] sm:$0xff]  }
  0x24   : > { %778 = vmatpush1.bf16.msra.mxu0 %v2228_v23  ;;  %851 = vmatpush1.bf16.msra.mxu1 %v2229_v24  ;;  %v2269_v9 = vld [vmem:[%s3069_s5 + $0x90] sm:$0xff]   ;;  %v2271_v11 = vld [vmem:[%s3069_s5 + $0xc8] sm:$0xff]   ;;  %v2274_v14 = vld [vmem:[%s3069_s5 + $0x40] sm:$0xff]  }
  0x25   : > { %779 = vmatprep.subr.bf16.mxu0 %v2230_v25  ;;  %852 = vmatprep.subr.bf16.mxu1 %v2232_v26  ;;  %v2272_v12 = vld [vmem:[%s3069_s5 + $0x8] sm:$0xff]   ;;  %v2275_v15 = vld [vmem:[%s3069_s5 + $0xc0] sm:$0xff]   ;;  %v1671_v18 = vld [vmem:[%s421_s10 + $0x10] sm:$0xff] }
  0x26   : > { %v2273_v13 = vld [vmem:[%s3069_s5 + $0x88] sm:$0xff]   ;;  %v2276_v16 = vld [vmem:[%s3069_s5] sm:$0xff]   ;;  %1689 = vperm.xlu1 %2193, %v1671_v18   ;;  %v1672_v20 = vld [vmem:[%s421_s10 + $0x18] sm:$0xff] }
  0x27   : > { %v2277_v17 = vld [vmem:[%s3069_s5 + $0x80] sm:$0xff]   ;;  %v1670_v21 = vld [vmem:[%s421_s10 + $0x8] sm:$0xff]  ;;  %v1676_v26 = vld [vmem:[%s421_s10 + $0x38] sm:$0xff] }
  0x28   : > { %780 = vmatpush1.bf16.msra.mxu0 %v2234_v29  ;;  %853 = vmatpush1.bf16.msra.mxu1 %v2235_v30  ;;  %v1669_v19 = vld [vmem:[%s421_s10] sm:$0xff]  ;;  %v1674_v22 = vld [vmem:[%s421_s10 + $0x28] sm:$0xff]  ;;  %v1675_v27 = vld [vmem:[%s421_s10 + $0x30] sm:$0xff] }
  0x29   : > { %781 = vmatprep.subr.bf16.mxu0 %v2236_v35  ;;  %854 = vmatprep.subr.bf16.mxu1 %v2238_v40  ;;  %v1673_v23 = vld [vmem:[%s421_s10 + $0x20] sm:$0xff]  ;;  %v1654_v24 = vld [vmem:[%s431_s13 + $0x8] sm:$0xff]  ;;  %v1656_v28 = vld [vmem:[%s431_s13 + $0x18] sm:$0xff] }
  0x2a   : > { %1679 = vperm.xlu0 %2192, %v1669_v19   ;;  %1694 = vperm.xlu1 %2193, %v1672_v20   ;;  %v1653_v25 = vld [vmem:[%s431_s13] sm:$0xff]  ;;  %vm1662_vm0 = vcmp.ne.f32.partialorder %v1654_v24, 0.0  ;;  %v1655_v29 = vld [vmem:[%s431_s13 + $0x10] sm:$0xff]  ;;  %vm1664_vm2 = vcmp.ne.f32.partialorder %v1656_v28, 0.0  ;;  %v1658_v33 = vld [vmem:[%s431_s13 + $0x28] sm:$0xff] }
  0x2b   : > { %vm1661_vm1 = vcmp.ne.f32.partialorder %v1653_v25, 0.0  ;;  %v1734_v30 = vsel %vm1662_vm0, 1, %v2366_v2  ;;  %vm1663_vm3 = vcmp.ne.f32.partialorder %v1655_v29, 0.0  ;;  %v1657_v34 = vld [vmem:[%s431_s13 + $0x20] sm:$0xff]  ;;  %v1736_v35 = vsel %vm1664_vm2, 1, %v2366_v2  ;;  %v1660_v38 = vld [vmem:[%s431_s13 + $0x38] sm:$0xff] }
  0x2c   : > { %782 = vmatpush1.bf16.msra.mxu0 %v2240_v43  ;;  %855 = vmatpush1.bf16.msra.mxu1 %v2241_v44  ;;  %v1733_v31 = vsel %vm1661_vm1, 1, %v2366_v2  ;;  %v1735_v36 = vsel %vm1663_vm3, 1, %v2366_v2  ;;  %vm1666_vm4 = vcmp.ne.f32.partialorder %v1658_v33, 0.0  ;;  %vm1665_vm5 = vcmp.ne.f32.partialorder %v1657_v34, 0.0  ;;  %v1659_v39 = vld [vmem:[%s431_s13 + $0x30] sm:$0xff] }
  0x2d   : > { %2087 = vmatprep.subr.bf16.mxu0 %v2246_v49  ;;  %2127 = vmatprep.subr.bf16.mxu1 %v2247_v50  ;;  %v1738_v40 = vsel %vm1666_vm4, 1, %v2366_v2  ;;  %v1737_v41 = vsel %vm1665_vm5, 1, %v2366_v2  ;;  %v573_v43 = vsub.s32 2, %v564_v37  ;;  %vm1668_vm6 = vcmp.ne.f32.partialorder %v1660_v38, 0.0  ;;  %v561_v44 = vld [vmem:[%s3068_s4] sm:$0xf] }
  0x2e   : > { %1684 = vperm.xlu0 %2192, %v1670_v21   ;;  %1704 = vperm.xlu1 %2193, %v1674_v22   ;;  %vm1667_vm7 = vcmp.ne.f32.partialorder %v1659_v39, 0.0  ;;  %v2666_v49 = vrot.slane %v561_v44, %v565_v42 }
  0x2f   : > { %800 = vmatmul.mubr.bf16.vlgmr.msra.gmra.mxu0 %v2242_v45  ;;  %873 = vmatmul.mubr.bf16.vlgmr.msra.gmra.mxu1 %v2242_v45  ;;  %v569_v45 = vsub.s32 1, %v564_v37  ;;  %v2668_v50 = vrot.slane %v561_v44, %v573_v43 }
  0x30   : > { %809 = vmatprep.mubr.bf16.mxu0 %v2366_v2  ;;  %882 = vmatprep.mubr.bf16.mxu1 %v2366_v2 }
  0x31   : > { %2088 = vmatpush3.bf16.msra.mxu0 %v2248_v51  ;;  %2128 = vmatpush3.bf16.msra.mxu1 %v2249_v52  ;;  %v2670_v51 = vrot.slane %v561_v44, %v569_v45 }
  0x32   : > { %2089 = vmatprep.subr.bf16.mxu0 %v2250_v53  ;;  %2129 = vmatprep.subr.bf16.mxu1 %v2251_v54 }
  0x33   : > { %1699 = vperm.xlu0 %2192, %v1673_v23   ;;  %1714 = vperm.xlu1 %2193, %v1676_v26  }
  0x35   : > { %2090 = vmatpush3.bf16.msra.mxu0 %v2252_v55  ;;  %2130 = vmatpush3.bf16.msra.mxu1 %v2253_v56 }
  0x36   : > { %2091 = vmatprep.subr.bf16.mxu0 %v2254_v57  ;;  %2131 = vmatprep.subr.bf16.mxu1 %v2255_v58 }
  0x37   : > { %810 = vmatmul.mubr.bf16.gmra.mxu0 %v2243_v46  ;;  %883 = vmatmul.mubr.bf16.gmra.mxu1 %v2243_v46  ;;  %v577_v46 = vsub.s32 3, %v564_v37 }
  0x38   : > { %819 = vmatprep.mubr.bf16.mxu0 %v2366_v2  ;;  %892 = vmatprep.mubr.bf16.mxu1 %v2366_v2 }
  0x39   : > { %2092 = vmatpush3.bf16.msra.mxu0 %v2256_v59  ;;  %2132 = vmatpush3.bf16.msra.mxu1 %v2257_v60  ;;  %v2672_v52 = vrot.slane %v561_v44, %v577_v46 }
  0x3a   : > { %2093 = vmatprep.subr.bf16.mxu0 %v2258_v61  ;;  %2133 = vmatprep.subr.bf16.mxu1 %v2259_v62 }
  0x3b   : > { %1709 = vperm.xlu0 %2192, %v1675_v27   ;;  %1745 = vperm.xlu1 %2193, %v1734_v30  }
  0x3d   : > { %2094 = vmatpush3.bf16.msra.mxu0 %v2260_v63  ;;  %2134 = vmatpush3.bf16.msra.mxu1 %v2261_v0 }
  0x3e   : > { %2095 = vmatprep.subr.bf16.mxu0 %v2262_v1  ;;  %2135 = vmatprep.subr.bf16.mxu1 %v2263_v3 }
  0x3f   : > { %820 = vmatmul.mubr.bf16.gmra.mxu0 %v2244_v47  ;;  %893 = vmatmul.mubr.bf16.gmra.mxu1 %v2244_v47  ;;  %v1740_v47 = vsel %vm1668_vm6, 1, %v2366_v2 }
  0x40   : > { %829 = vmatprep.mubr.bf16.mxu0 %v2366_v2  ;;  %902 = vmatprep.mubr.bf16.mxu1 %v2366_v2 }
  0x41   : > { %2096 = vmatpush3.bf16.msra.mxu0 %v2264_v4  ;;  %2136 = vmatpush3.bf16.msra.mxu1 %v2265_v5 }
  0x42   : > { %2097 = vmatprep.subr.bf16.mxu0 %v2266_v6  ;;  %2137 = vmatprep.subr.bf16.mxu1 %v2267_v7 }
  0x43   : > { %1742 = vperm.xlu0 %2192, %v1733_v31   ;;  %1751 = vperm.xlu1 %2193, %v1736_v35  }
  0x45   : > { %2098 = vmatpush3.bf16.msra.mxu0 %v2268_v8  ;;  %2138 = vmatpush3.bf16.msra.mxu1 %v2269_v9 }
  0x46   : > { %2099 = vmatprep.subr.bf16.mxu0 %v2270_v10  ;;  %2139 = vmatprep.subr.bf16.mxu1 %v2271_v11 }
  0x47   : > { %830 = vmatmul.mubr.bf16.gmra.mxu0 %v2245_v48  ;;  %903 = vmatmul.mubr.bf16.gmra.mxu1 %v2245_v48  ;;  %v1739_v48 = vsel %vm1667_vm7, 1, %v2366_v2 }
  0x48   : > { %1748 = vperm.xlu0 %2192, %v1735_v36   ;;  %1757 = vperm.xlu1 %2193, %v1738_v40  }
  0x49   : > { %2100 = vmatpush3.bf16.msra.mxu0 %v2272_v12  ;;  %2140 = vmatpush3.bf16.msra.mxu1 %v2273_v13 }
  0x4a   : > { %2101 = vmatprep.subr.bf16.mxu0 %v2274_v14  ;;  %2141 = vmatprep.subr.bf16.mxu1 %v2275_v15 }
  0x4c   : > { %1754 = vperm.xlu0 %2192, %v1737_v41   ;;  %1763 = vperm.xlu1 %2193, %v1740_v47  }
  0x4d   : > { %2102 = vmatpush3.bf16.msra.mxu0 %v2276_v16  ;;  %2142 = vmatpush3.bf16.msra.mxu1 %v2277_v17 }
  0x50   : > { %1760 = vperm.xlu0 %2192, %v1739_v48  }
  0xef   : > { %v801_v53 = vpop.f32.mrf.mxu0  ;;  %v874_v54 = vpop.f32.mrf.mxu1 }
  0xf0   : > { %v2675_v55 = vadd.f32 %v801_v53, %v2666_v49  ;;  %v2678_v56 = vadd.f32 %v874_v54, %v2668_v50 }
  0xf1   : > { %v803_v57 = vpop.f32.mrf.mxu0  ;;  %v876_v2 = vpop.f32.mrf.mxu1 }
  0xf2   : > { %v913_v58 = vmul.f32 %v2675_v55, %v2675_v55  ;;  %v915_v59 = vmul.f32 %v2678_v56, %v2678_v56  ;;  %v2685_v60 = vadd.f32 %v803_v57, %v2670_v51  ;;  %v2688_v61 = vadd.f32 %v876_v2, %v2672_v52 }
  0xf3   : > { %v805_v62 = vpop.f32.mrf.mxu0  ;;  %v878_v63 = vpop.f32.mrf.mxu1 }
  0xf4   : > { %v945_v0 = vmul.f32 %v913_v58, %v2675_v55  ;;  %v947_v1 = vmul.f32 %v915_v59, %v2678_v56  ;;  %v914_v3 = vmul.f32 %v2685_v60, %v2685_v60  ;;  %v916_v4 = vmul.f32 %v2688_v61, %v2688_v61 }
  0xf5   : > { %v2697_v5 = vadd.f32 %v805_v62, %v2666_v49  ;;  %v2700_v6 = vadd.f32 %v878_v63, %v2668_v50  ;;  %v807_v7 = vpop.f32.mrf.mxu0  ;;  %v880_v8 = vpop.f32.mrf.mxu1 }
  0xf6   : > { %v977_v9 = vmul.f32 0.044715, %v945_v0  ;;  %v979_v10 = vmul.f32 0.044715, %v947_v1  ;;  %v946_v11 = vmul.f32 %v914_v3, %v2685_v60  ;;  %v948_v12 = vmul.f32 %v916_v4, %v2688_v61 }
  0xf7   : > { %v917_v13 = vmul.f32 %v2697_v5, %v2697_v5  ;;  %v919_v14 = vmul.f32 %v2700_v6, %v2700_v6  ;;  %v2709_v15 = vadd.f32 %v807_v7, %v2670_v51  ;;  %v2712_v16 = vadd.f32 %v880_v8, %v2672_v52  ;;  %v811_v17 = vpop.f32.mrf.mxu0  ;;  %v884_v18 = vpop.f32.mrf.mxu1 }
  0xf8   : > { %v1009_v19 = vadd.f32 %v977_v9, %v2675_v55  ;;  %v1011_v20 = vadd.f32 %v979_v10, %v2678_v56  ;;  %v978_v21 = vmul.f32 0.044715, %v946_v11  ;;  %v980_v22 = vmul.f32 0.044715, %v948_v12 }
  0xf9   : > { %v949_v23 = vmul.f32 %v917_v13, %v2697_v5  ;;  %v951_v24 = vmul.f32 %v919_v14, %v2700_v6  ;;  %v918_v25 = vmul.f32 %v2709_v15, %v2709_v15  ;;  %v920_v26 = vmul.f32 %v2712_v16, %v2712_v16  ;;  %v813_v31 = vpop.f32.mrf.mxu0  ;;  %v886_v36 = vpop.f32.mrf.mxu1 }
  0xfa   : > { %v1041_v27 = vmul.f32 0.7978846, %v1009_v19  ;;  %v1043_v28 = vmul.f32 0.7978846, %v1011_v20  ;;  %v1010_v29 = vadd.f32 %v978_v21, %v2685_v60  ;;  %v1012_v30 = vadd.f32 %v980_v22, %v2688_v61 }
  0xfb   : > { %v981_v32 = vmul.f32 0.044715, %v949_v23  ;;  %v983_v33 = vmul.f32 0.044715, %v951_v24  ;;  %v950_v34 = vmul.f32 %v918_v25, %v2709_v15  ;;  %v952_v35 = vmul.f32 %v920_v26, %v2712_v16  ;;  %v815_v46 = vpop.f32.mrf.mxu0  ;;  %v888_v54 = vpop.f32.mrf.mxu1 }
  0xfc   : > { %2278 = vtanh.f32 %v1041_v27  ;;  %v1042_v37 = vmul.f32 0.7978846, %v1010_v29  ;;  %v1044_v38 = vmul.f32 0.7978846, %v1012_v30  ;;  %v2727_v39 = vadd.f32 %v811_v17, %v2666_v49 }
  0xfd   : > { %2280 = vtanh.f32 %v1043_v28  ;;  %v1013_v40 = vadd.f32 %v981_v32, %v2697_v5  ;;  %v1015_v41 = vadd.f32 %v983_v33, %v2700_v6  ;;  %v982_v42 = vmul.f32 0.044715, %v950_v34  ;;  %v817_v7 = vpop.f32.mrf.mxu0  ;;  %v890_v11 = vpop.f32.mrf.mxu1 }
  0xfe   : > { %2282 = vtanh.f32 %v1042_v37  ;;  %v984_v43 = vmul.f32 0.044715, %v952_v35  ;;  %v921_v44 = vmul.f32 %v2727_v39, %v2727_v39  ;;  %v2734_v45 = vadd.f32 %v884_v18, %v2668_v50 }
  0xff   : > { %2284 = vtanh.f32 %v1044_v38  ;;  %v1045_v47 = vmul.f32 0.7978846, %v1013_v40  ;;  %v1047_v48 = vmul.f32 0.7978846, %v1015_v41  ;;  %v1014_v53 = vadd.f32 %v982_v42, %v2709_v15  ;;  %v821_v25 = vpop.f32.mrf.mxu0  ;;  %v894_v30 = vpop.f32.mrf.mxu1 }
 0x100   : > { %v1016_v57 = vadd.f32 %v984_v43, %v2712_v16  ;;  %v953_v2 = vmul.f32 %v921_v44, %v2727_v39  ;;  %v923_v58 = vmul.f32 %v2734_v45, %v2734_v45  ;;  %v2742_v59 = vadd.f32 %v813_v31, %v2670_v51 }
 0x101   : > { %2286 = vtanh.f32 %v1045_v47  ;;  %v1046_v62 = vmul.f32 0.7978846, %v1014_v53  ;;  %v2745_v63 = vadd.f32 %v886_v36, %v2672_v52  ;;  %v2748_v0 = vadd.f32 %v815_v46, %v2666_v49  ;;  %v823_v44 = vpop.f32.mrf.mxu0 }
 0x102   : > { %2288 = vtanh.f32 %v1047_v48  ;;  %v1048_v1 = vmul.f32 0.7978846, %v1016_v57  ;;  %v985_v3 = vmul.f32 0.044715, %v953_v2  ;;  %v955_v4 = vmul.f32 %v923_v58, %v2734_v45  ;;  %v896_v57 = vpop.f32.mrf.mxu1 }
 0x103   : > { %2290 = vtanh.f32 %v1046_v62  ;;  %v922_v8 = vmul.f32 %v2742_v59, %v2742_v59  ;;  %v924_v9 = vmul.f32 %v2745_v63, %v2745_v63  ;;  %v925_v10 = vmul.f32 %v2748_v0, %v2748_v0 }
 0x104   : > { %2292 = vtanh.f32 %v1048_v1  ;;  %v1017_v12 = vadd.f32 %v985_v3, %v2727_v39  ;;  %v987_v13 = vmul.f32 0.044715, %v955_v4  ;;  %v2759_v14 = vadd.f32 %v888_v54, %v2668_v50 }
 0x105   : > { %v954_v17 = vmul.f32 %v922_v8, %v2742_v59  ;;  %v956_v18 = vmul.f32 %v924_v9, %v2745_v63  ;;  %v957_v19 = vmul.f32 %v925_v10, %v2748_v0  ;;  %v2765_v20 = vadd.f32 %v817_v7, %v2670_v51 }
 0x106   : > { %v1049_v21 = vmul.f32 0.7978846, %v1017_v12  ;;  %v1019_v22 = vadd.f32 %v987_v13, %v2734_v45  ;;  %v927_v23 = vmul.f32 %v2759_v14, %v2759_v14  ;;  %v2771_v24 = vadd.f32 %v890_v11, %v2672_v52  ;;  %v825_v13 = vpop.f32.mrf.mxu0 }
 0x107   : > { %v986_v26 = vmul.f32 0.044715, %v954_v17  ;;  %v988_v27 = vmul.f32 0.044715, %v956_v18  ;;  %v989_v28 = vmul.f32 0.044715, %v957_v19  ;;  %v926_v29 = vmul.f32 %v2765_v20, %v2765_v20 }
 0x108   : > { %2294 = vtanh.f32 %v1049_v21  ;;  %v1051_v31 = vmul.f32 0.7978846, %v1019_v22  ;;  %v959_v32 = vmul.f32 %v927_v23, %v2759_v14  ;;  %v928_v33 = vmul.f32 %v2771_v24, %v2771_v24  ;;  %v898_v22 = vpop.f32.mrf.mxu1 }
 0x109   : > { %v2279_v34 = vpop.eup %2278  ;;  %v1018_v35 = vadd.f32 %v986_v26, %v2742_v59  ;;  %v1020_v36 = vadd.f32 %v988_v27, %v2745_v63  ;;  %v1021_v37 = vadd.f32 %v989_v28, %v2748_v0  ;;  %v958_v38 = vmul.f32 %v926_v29, %v2765_v20 }
 0x10a   : > { %v2281_v40 = vpop.eup %2280  ;;  %v1105_v41 = vadd.f32 1.0, %v2279_v34  ;;  %2296 = vtanh.f32 %v1051_v31  ;;  %v991_v42 = vmul.f32 0.044715, %v959_v32  ;;  %v960_v43 = vmul.f32 %v928_v33, %v2771_v24 }
 0x10b   : > { %v2783_v46 = vpop.eup %2282  ;;  %v1107_v47 = vadd.f32 1.0, %v2281_v40  ;;  %v1050_v48 = vmul.f32 0.7978846, %v1018_v35  ;;  %v1052_v53 = vmul.f32 0.7978846, %v1020_v36  ;;  %v2786_v54 = vadd.f32 %v821_v25, %v2666_v49  ;;  %v827_v35 = vpop.f32.mrf.mxu0 }
 0x10c   : > { %v2788_v2 = vpop.eup %2284  ;;  %v1137_v58 = vmul.f32 0.5, %v1105_v41  ;;  %v1053_v62 = vmul.f32 0.7978846, %v1021_v37  ;;  %v1023_v1 = vadd.f32 %v991_v42, %v2759_v14  ;;  %v990_v3 = vmul.f32 0.044715, %v958_v38  ;;  %v900_v38 = vpop.f32.mrf.mxu1 }
 0x10d   : > { %v1139_v4 = vmul.f32 0.5, %v1107_v47  ;;  %2298 = vtanh.f32 %v1050_v48  ;;  %v992_v7 = vmul.f32 0.044715, %v960_v43  ;;  %v929_v8 = vmul.f32 %v2786_v54, %v2786_v54 }
 0x10e   : > { %v2287_v9 = vpop.eup %2286  ;;  %v2794_v10 = vmul.f32 %v1137_v58, %v2675_v55  ;;  %2300 = vtanh.f32 %v1052_v53  ;;  %v1055_v11 = vmul.f32 0.7978846, %v1023_v1  ;;  %v1022_v12 = vadd.f32 %v990_v3, %v2765_v20  ;;  %v831_v1 = vpop.f32.mrf.mxu0 }
 0x10f   : > { %v2289_v17 = vpop.eup %2288  ;;  %v2798_v18 = vmul.f32 %v1139_v4, %v2678_v56  ;;  %v1109_v19 = vadd.f32 1.0, %v2287_v9  ;;  %2302 = vtanh.f32 %v1053_v62  ;;  %v1024_v21 = vadd.f32 %v992_v7, %v2771_v24 }
 0x110   : > { %v2801_v23 = vpop.eup %2290  ;;  %v1111_v25 = vadd.f32 1.0, %v2289_v17  ;;  %2304 = vtanh.f32 %v1055_v11  ;;  %v1054_v55 = vmul.f32 0.7978846, %v1022_v12  ;;  %v961_v26 = vmul.f32 %v929_v8, %v2786_v54  ;;  %v904_v11 = vpop.f32.mrf.mxu1 }
 0x111   : > { %v2804_v27 = vpop.eup %2292  ;;  %v1141_v28 = vmul.f32 0.5, %v1109_v19  ;;  %v1056_v29 = vmul.f32 0.7978846, %v1024_v21  ;;  %v2807_v31 = vadd.f32 %v894_v30, %v2668_v50  ;;  %v2810_v56 = vadd.f32 %v823_v44, %v2670_v51 }
 0x112   : > { %v1143_v32 = vmul.f32 0.5, %v1111_v25  ;;  %2306 = vtanh.f32 %v1054_v55  ;;  %v993_v33 = vmul.f32 0.044715, %v961_v26  ;;  %v2813_v34 = vadd.f32 %v896_v57, %v2672_v52 }
 0x113   : > { %v2816_v36 = vmul.f32 %v1141_v28, %v2697_v5  ;;  %2308 = vtanh.f32 %v1056_v29  ;;  %v931_v37 = vmul.f32 %v2807_v31, %v2807_v31  ;;  %v930_v30 = vmul.f32 %v2810_v56, %v2810_v56 }
 0x114   : > { %v2823_v40 = vmul.f32 %v1143_v32, %v2700_v6  ;;  %v1025_v41 = vadd.f32 %v993_v33, %v2786_v54  ;;  %v932_v42 = vmul.f32 %v2813_v34, %v2813_v34  ;;  %v2829_v43 = vadd.f32 %v825_v13, %v2666_v49  ;;  %v833_v33 = vpop.f32.mrf.mxu0 }
 0x115   : > { %v2831_v5 = vpop.eup %2294  ;;  %v963_v47 = vmul.f32 %v931_v37, %v2807_v31  ;;  %v962_v48 = vmul.f32 %v930_v30, %v2810_v56  ;;  %v2838_v6 = vadd.f32 %v898_v22, %v2668_v50  ;;  %v2850_v9 = vadd.f32 %v827_v35, %v2670_v51 }
 0x116   : > { %v1057_v57 = vmul.f32 0.7978846, %v1025_v41  ;;  %v964_v58 = vmul.f32 %v932_v42, %v2813_v34  ;;  %v933_v62 = vmul.f32 %v2829_v43, %v2829_v43  ;;  %v2854_v17 = vadd.f32 %v900_v38, %v2672_v52  ;;  %v906_v42 = vpop.f32.mrf.mxu1 }
 0x117   : > { %v2845_v3 = vpop.eup %2296  ;;  %v995_v4 = vmul.f32 0.044715, %v963_v47  ;;  %v994_v7 = vmul.f32 0.044715, %v962_v48  ;;  %v935_v8 = vmul.f32 %v2838_v6, %v2838_v6  ;;  %v934_v25 = vmul.f32 %v2850_v9, %v2850_v9 }
 0x118   : > { %2310 = vtanh.f32 %v1057_v57  ;;  %v996_v12 = vmul.f32 0.044715, %v964_v58  ;;  %v965_v13 = vmul.f32 %v933_v62, %v2829_v43  ;;  %v936_v29 = vmul.f32 %v2854_v17, %v2854_v17 }
 0x119   : > { %v1027_v19 = vadd.f32 %v995_v4, %v2807_v31  ;;  %v1026_v21 = vadd.f32 %v994_v7, %v2810_v56  ;;  %v967_v22 = vmul.f32 %v935_v8, %v2838_v6  ;;  %v2867_v32 = vadd.f32 %v831_v1, %v2666_v49 }
 0x11a   : > { %v2861_v55 = vpop.eup %2298  ;;  %v1028_v26 = vadd.f32 %v996_v12, %v2813_v34  ;;  %v997_v28 = vmul.f32 0.044715, %v965_v13  ;;  %v966_v41 = vmul.f32 %v934_v25, %v2850_v9  ;;  %v968_v58 = vmul.f32 %v936_v29, %v2854_v17  ;;  %v908_v29 = vpop.f32.mrf.mxu1 }
 0x11b   : > { %3074 = vst [vmem:[#allocation4_spill] sm:$0xff] %v2867_v32  ;;  %v2869_v35 = vpop.eup %2300  ;;  %v1059_v37 = vmul.f32 0.7978846, %v1027_v19  ;;  %v1058_v30 = vmul.f32 0.7978846, %v1026_v21  ;;  %v937_v62 = vmul.f32 %v2867_v32, %v2867_v32  ;;  %v2882_v8 = vadd.f32 %v904_v11, %v2668_v50  ;;  %v835_v21 = vpop.f32.mrf.mxu0 }
 0x11c   : > { %v999_v38 = vmul.f32 0.044715, %v967_v22  ;;  %v2872_v47 = vpop.eup %2302  ;;  %v1060_v48 = vmul.f32 0.7978846, %v1028_v26  ;;  %v1029_v57 = vadd.f32 %v997_v28, %v2829_v43  ;;  %v998_v7 = vmul.f32 0.044715, %v966_v41 }
 0x11d   : > { %v2878_v1 = vpop.eup %2304  ;;  %2312 = vtanh.f32 %v1059_v37  ;;  %3075 = vst [vmem:[#allocation5_spill] sm:$0xff] %v2882_v8  ;;  %v1000_v13 = vmul.f32 0.044715, %v968_v58  ;;  %v969_v19 = vmul.f32 %v937_v62, %v2867_v32  ;;  %v939_v28 = vmul.f32 %v2882_v8, %v2882_v8 }
 0x11e   : > { %v1031_v4 = vadd.f32 %v999_v38, %v2838_v6  ;;  %2314 = vtanh.f32 %v1058_v30  ;;  %v1061_v12 = vmul.f32 0.7978846, %v1029_v57  ;;  %v1030_v26 = vadd.f32 %v998_v7, %v2850_v9 }
 0x11f   : > { %v2885_v22 = vpop.eup %2306  ;;  %2316 = vtanh.f32 %v1060_v48  ;;  %v1032_v11 = vadd.f32 %v1000_v13, %v2854_v17  ;;  %v1001_v30 = vmul.f32 0.044715, %v969_v19  ;;  %v2894_v38 = vadd.f32 %v833_v33, %v2670_v51 }
 0x120   : > { %v1063_v25 = vmul.f32 0.7978846, %v1031_v4  ;;  %v2890_v37 = vpop.eup %2308  ;;  %2318 = vtanh.f32 %v1061_v12  ;;  %v1062_v41 = vmul.f32 0.7978846, %v1030_v26  ;;  %v971_v48 = vmul.f32 %v939_v28, %v2882_v8  ;;  %v837_v12 = vpop.f32.mrf.mxu0 }
 0x121   : > { %v2898_v57 = vadd.f32 %v906_v42, %v2672_v52  ;;  %v1064_v58 = vmul.f32 0.7978846, %v1032_v11  ;;  %v1033_v62 = vadd.f32 %v1001_v30, %v2867_v32  ;;  %v938_v4 = vmul.f32 %v2894_v38, %v2894_v38  ;;  %v910_v42 = vpop.f32.mrf.mxu1 }
 0x122   : > { %2320 = vtanh.f32 %v1063_v25  ;;  %v2904_v7 = vadd.f32 %v835_v21, %v2666_v49  ;;  %v1003_v33 = vmul.f32 0.044715, %v971_v48  ;;  %v2909_v19 = vadd.f32 %v908_v29, %v2668_v50 }
 0x123   : > { %2322 = vtanh.f32 %v1062_v41  ;;  %v940_v13 = vmul.f32 %v2898_v57, %v2898_v57  ;;  %v1065_v25 = vmul.f32 0.7978846, %v1033_v62  ;;  %v970_v26 = vmul.f32 %v938_v4, %v2894_v38 }
 0x124   : > { %2324 = vtanh.f32 %v1064_v58  ;;  %v941_v28 = vmul.f32 %v2904_v7, %v2904_v7  ;;  %v1035_v49 = vadd.f32 %v1003_v33, %v2882_v8  ;;  %v943_v30 = vmul.f32 %v2909_v19, %v2909_v19 }
 0x125   : > { %v2914_v11 = vpop.eup %2310  ;;  %v972_v21 = vmul.f32 %v940_v13, %v2898_v57  ;;  %v2921_v50 = vadd.f32 %v837_v12, %v2670_v51  ;;  %2326 = vtanh.f32 %v1065_v25  ;;  %v1002_v29 = vmul.f32 0.044715, %v970_v26 }
 0x126   : > { %v973_v41 = vmul.f32 %v941_v28, %v2904_v7  ;;  %v2925_v48 = vadd.f32 %v910_v42, %v2672_v52  ;;  %v1067_v58 = vmul.f32 0.7978846, %v1035_v49  ;;  %v975_v4 = vmul.f32 %v943_v30, %v2909_v19 }
 0x127   : > { %v1004_v62 = vmul.f32 0.044715, %v972_v21  ;;  %v942_v33 = vmul.f32 %v2921_v50, %v2921_v50  ;;  %v1034_v13 = vadd.f32 %v1002_v29, %v2894_v38  ;;  %v1106_v12 = vadd.f32 1.0, %v2783_v46 }
 0x128   : > { %v1005_v53 = vmul.f32 0.044715, %v973_v41  ;;  %v944_v51 = vmul.f32 %v2925_v48, %v2925_v48  ;;  %2328 = vtanh.f32 %v1067_v58  ;;  %v1007_v52 = vmul.f32 0.044715, %v975_v4 }
 0x129   : > { %v1036_v25 = vadd.f32 %v1004_v62, %v2898_v57  ;;  %v974_v42 = vmul.f32 %v942_v33, %v2921_v50  ;;  %v1066_v28 = vmul.f32 0.7978846, %v1034_v13  ;;  %v1110_v30 = vadd.f32 1.0, %v2801_v23 }
 0x12a   : > { %v2936_v26 = vpop.eup %2312  ;;  %v1037_v49 = vadd.f32 %v1005_v53, %v2904_v7  ;;  %v976_v21 = vmul.f32 %v944_v51, %v2925_v48  ;;  %v1039_v44 = vadd.f32 %v1007_v52, %v2909_v19  ;;  %v1138_v58 = vmul.f32 0.5, %v1106_v12 }
 0x12b   : > { %v2315_v29 = vpop.eup %2314  ;;  %v1068_v41 = vmul.f32 0.7978846, %v1036_v25  ;;  %v1006_v46 = vmul.f32 0.044715, %v974_v42  ;;  %2330 = vtanh.f32 %v1066_v28  ;;  %v1142_v33 = vmul.f32 0.5, %v1110_v30 }
 0x12c   : > { %v2942_v8 = vpop.eup %2316  ;;  %v1069_v62 = vmul.f32 0.7978846, %v1037_v49  ;;  %v1008_v4 = vmul.f32 0.044715, %v976_v21  ;;  %v1071_v53 = vmul.f32 0.7978846, %v1039_v44  ;;  %v1170_v23 = vmul.f32 %v1138_v58, %v2685_v60 }
 0x12d   : > { %v2944_v32 = vpop.eup %2318  ;;  %2332 = vtanh.f32 %v1068_v41  ;;  %v1038_v13 = vadd.f32 %v1006_v46, %v2921_v50  ;;  %v1174_v12 = vmul.f32 %v1142_v33, %v2709_v15  ;;  %v1108_v52 = vadd.f32 1.0, %v2788_v2 }
 0x12e   : > { %2334 = vtanh.f32 %v1069_v62  ;;  %v1040_v25 = vadd.f32 %v1008_v4, %v2925_v48  ;;  %v1112_v28 = vadd.f32 1.0, %v2804_v27  ;;  %v1114_v49 = vadd.f32 1.0, %v2861_v55 }
 0x12f   : > { %v2948_v51 = vpop.eup %2320  ;;  %2336 = vtanh.f32 %v1071_v53  ;;  %v1070_v42 = vmul.f32 0.7978846, %v1038_v13  ;;  %v1210_v30 = vpack.c.bf16 %v1174_v12, %v1170_v23  ;;  %v1140_v41 = vmul.f32 0.5, %v1108_v52 }
 0x130   : > { %v2323_v44 = vpop.eup %2322  ;;  %v1072_v21 = vmul.f32 0.7978846, %v1040_v25  ;;  %v1118_v60 = vadd.f32 1.0, %v2885_v22  ;;  %v1144_v58 = vmul.f32 0.5, %v1112_v28  ;;  %v1146_v62 = vmul.f32 0.5, %v1114_v49 }
 0x131   : > { %v2325_v46 = vpop.eup %2324  ;;  %2338 = vtanh.f32 %v1070_v42  ;;  %v1116_v15 = vadd.f32 1.0, %v2869_v35  ;;  %1513 = vmatprep.mubr.bf16.mxu0 %v1210_v30  ;;  %v1172_v2 = vmul.f32 %v1140_v41, %v2688_v61  ;;  %v1120_v27 = vadd.f32 1.0, %v2890_v37 }
 0x132   : > { %2340 = vtanh.f32 %v1072_v21  ;;  %v1150_v4 = vmul.f32 0.5, %v1118_v60  ;;  %v2959_v55 = vpop.eup %2326  ;;  %v1176_v33 = vmul.f32 %v1144_v58, %v2712_v16  ;;  %v3076_v22 = vpack.c.bf16 %v2816_v36, %v2794_v10 }
 0x133   : > { %v1178_v53 = vmul.f32 %v1146_v62, %v2742_v59  ;;  %v1148_v13 = vmul.f32 0.5, %v1116_v15  ;;  %v1113_v35 = vadd.f32 1.0, %v2831_v5  ;;  %v1152_v25 = vmul.f32 0.5, %v1120_v27 }
 0x134   : > { %1514 = vmatmul.mubr.bf16.vlgmr.msra.gmra.mxu0 %v3076_v22  ;;  %v1182_v23 = vmul.f32 %v1150_v4, %v2765_v20  ;;  %v1117_v61 = vadd.f32 1.0, %v2872_v47  ;;  %v1115_v37 = vadd.f32 1.0, %v2845_v3  ;;  %v1212_v12 = vpack.c.bf16 %v1176_v33, %v1172_v2 }
 0x135   : > { %v1180_v52 = vmul.f32 %v1148_v13, %v2745_v63  ;;  %v1145_v16 = vmul.f32 0.5, %v1113_v35  ;;  %v1119_v42 = vadd.f32 1.0, %v2878_v1  ;;  %v2972_v10 = vpop.eup %2328  ;;  %v1184_v59 = vmul.f32 %v1152_v25, %v2771_v24 }
 0x136   : > { %v1214_v36 = vpack.c.bf16 %v1182_v23, %v1178_v53  ;;  %v1149_v28 = vmul.f32 0.5, %v1117_v61  ;;  %v1147_v5 = vmul.f32 0.5, %v1115_v37  ;;  %1578 = vmatprep.mubr.bf16.mxu1 %v1212_v12  ;;  %v1122_v47 = vadd.f32 1.0, %v2315_v29 }
 0x137   : > { %v1177_v20 = vmul.f32 %v1145_v16, %v2727_v39  ;;  %v1151_v49 = vmul.f32 0.5, %v1119_v42  ;;  %v1126_v21 = vadd.f32 1.0, %v2323_v44  ;;  %v3077_v3 = vpack.c.bf16 %v2823_v40, %v2798_v18 }
 0x138   : > { %1521 = vmatprep.mubr.bf16.mxu0 %v1214_v36  ;;  %v1216_v63 = vpack.c.bf16 %v1184_v59, %v1180_v52  ;;  %v1181_v1 = vmul.f32 %v1149_v28, %v2748_v0  ;;  %v1179_v30 = vmul.f32 %v1147_v5, %v2734_v45  ;;  %v1124_v24 = vadd.f32 1.0, %v2942_v8  ;;  %v2331_v41 = vpop.eup %2330 }
 0x139   : > { %1579 = vmatmul.mubr.bf16.vlgmr.msra.gmra.mxu1 %v3077_v3  ;;  %v1183_v60 = vmul.f32 %v1151_v49, %v2759_v14  ;;  %v1154_v58 = vmul.f32 0.5, %v1122_v47  ;;  %v1158_v39 = vmul.f32 0.5, %v1126_v21  ;;  %v1128_v62 = vadd.f32 1.0, %v2325_v46 }
 0x13a   : > { %v2333_v29 = vpop.eup %2332  ;;  %1586 = vmatprep.mubr.bf16.mxu1 %v1216_v63  ;;  %v1213_v44 = vpack.c.bf16 %v1181_v1, %v1177_v20  ;;  %v1156_v15 = vmul.f32 0.5, %v1124_v24  ;;  %v1121_v18 = vadd.f32 1.0, %v2914_v11  ;;  %v1125_v40 = vadd.f32 1.0, %v2944_v32 }
 0x13b   : > { %v2335_v2 = vpop.eup %2334  ;;  %v1215_v0 = vpack.c.bf16 %v1183_v60, %v1179_v30  ;;  %v1186_v45 = vmul.f32 %v1154_v58, %v2810_v56  ;;  %v1190_v8 = vmul.f32 %v1158_v39, %v2850_v9  ;;  %v1160_v4 = vmul.f32 0.5, %v1128_v62  ;;  %v1690_v39 = vpop.permute.xlu1 %1689 }
 0x13c   : > { %v2337_v27 = vpop.eup %2336  ;;  %1522 = vmatmul.mubr.bf16.gmra.mxu0 %v1213_v44  ;;  %v1188_v14 = vmul.f32 %v1156_v15, %v2813_v34  ;;  %v1153_v46 = vmul.f32 0.5, %v1121_v18  ;;  %v1157_v33 = vmul.f32 0.5, %v1125_v40  ;;  %v1123_v22 = vadd.f32 1.0, %v2936_v26 }
 0x13d   : > { %v1218_v53 = vpack.c.bf16 %v1190_v8, %v1186_v45  ;;  %v1192_v11 = vmul.f32 %v1160_v4, %v2854_v17  ;;  %v1127_v32 = vadd.f32 1.0, %v2948_v51  ;;  %v1130_v13 = vadd.f32 1.0, %v2331_v41 }
 0x13e   : > { %v2339_v35 = vpop.eup %2338  ;;  %v1185_v56 = vmul.f32 %v1153_v46, %v2786_v54  ;;  %v1189_v9 = vmul.f32 %v1157_v33, %v2829_v43  ;;  %v1155_v23 = vmul.f32 0.5, %v1123_v22  ;;  %v1132_v25 = vadd.f32 1.0, %v2333_v29 }
 0x13f   : > { %v2341_v61 = vpop.eup %2340  ;;  %1529 = vmatprep.mubr.bf16.mxu0 %v1218_v53  ;;  %v1220_v34 = vpack.c.bf16 %v1192_v11, %v1188_v14  ;;  %v1159_v37 = vmul.f32 0.5, %v1127_v32  ;;  %v1134_v12 = vadd.f32 1.0, %v2339_v35  ;;  %v1162_v52 = vmul.f32 0.5, %v1130_v13  ;;  %v3005_v29 = vpop.permute.xlu1 %1694 }
 0x140   : > { %v1136_v26 = vadd.f32 1.0, %v2341_v61  ;;  %v1164_v16 = vmul.f32 0.5, %v1132_v25  ;;  %v1217_v17 = vpack.c.bf16 %v1189_v9, %v1185_v56  ;;  %v1129_v42 = vadd.f32 1.0, %v2959_v55  ;;  %v1725_v9 = vld [vmem:[%s2505_s14] sm:$0xff] }
 0x141   : > { %1587 = vmatmul.mubr.bf16.gmra.mxu1 %v1215_v0  ;;  %v1166_v51 = vmul.f32 0.5, %v1134_v12  ;;  %v1187_v54 = vmul.f32 %v1155_v23, %v2807_v31  ;;  %v1191_v43 = vmul.f32 %v1159_v37, %v2838_v6  ;;  %v1133_v59 = vadd.f32 1.0, %v2335_v2 }
 0x142   : > { %1594 = vmatprep.mubr.bf16.mxu1 %v1220_v34  ;;  %v1168_v36 = vmul.f32 0.5, %v1136_v26  ;;  %v1194_v28 = vmul.f32 %v1162_v52, %v2894_v38  ;;  %v1196_v20 = vmul.f32 %v1164_v16, %v2898_v57  ;;  %v1135_v49 = vadd.f32 1.0, %v2337_v27  ;;  %v3078_v38 = vld [vmem:[#allocation4_spill] sm:$0xff]  ;;  %v3016_v27 = vld [vmem:[%s3070_s6] ss:$0 sm:$0xff] }
 0x143   : > { %v1198_v5 = vmul.f32 %v1166_v51, %v2921_v50  ;;  %v1161_v21 = vmul.f32 0.5, %v1129_v42  ;;  %v1165_v3 = vmul.f32 0.5, %v1133_v59  ;;  %v1131_v55 = vadd.f32 1.0, %v2972_v10  ;;  %v1680_v10 = vpop.permute.xlu0 %1679  ;;  %v3009_v40 = vpop.permute.xlu1 %1704  ;;  %v1726_v51 = vld [vmem:[%s2505_s14 + $0x8] sm:$0xff] }
 0x144   : > { %1530 = vmatmul.mubr.bf16.gmra.mxu0 %v1217_v17  ;;  %v1200_v47 = vmul.f32 %v1168_v36, %v2925_v48  ;;  %v1219_v31 = vpack.c.bf16 %v1191_v43, %v1187_v54  ;;  %v1167_v30 = vmul.f32 0.5, %v1135_v49  ;;  %v3079_v48 = vld [vmem:[#allocation5_spill] sm:$0xff] }
 0x145   : > { %v1222_v63 = vpack.c.bf16 %v1198_v5, %v1194_v28  ;;  %v1197_v6 = vmul.f32 %v1165_v3, %v2904_v7  ;;  %v1193_v50 = vmul.f32 %v1161_v21, %v3078_v38  ;;  %v1163_v24 = vmul.f32 0.5, %v1131_v55  ;;  %v1727_v3 = vld [vmem:[%s2505_s14 + $0x10] sm:$0xff] }
 0x146   : > { %v1224_v1 = vpack.c.bf16 %v1200_v47, %v1196_v20  ;;  %v1199_v41 = vmul.f32 %v1167_v30, %v2909_v19 }
 0x147   : > { %1537 = vmatprep.mubr.bf16.mxu0 %v1222_v63  ;;  %v1221_v57 = vpack.c.bf16 %v1197_v6, %v1193_v50  ;;  %v1195_v60 = vmul.f32 %v1163_v24, %v3079_v48  ;;  %v1685_v62 = vpop.permute.xlu0 %1684  ;;  %v3018_v32 = vpop.permute.xlu1 %1714  ;;  %v1728_v48 = vld [vmem:[%s2505_s14 + $0x18] sm:$0xff] }
 0x149   : > { %1595 = vmatmul.mubr.bf16.gmra.mxu1 %v1219_v31  ;;  %v1223_v58 = vpack.c.bf16 %v1199_v41, %v1195_v60 }
 0x14a   : > { %1602 = vmatprep.mubr.bf16.mxu1 %v1224_v1 }
 0x14b   : > { %v3007_v7 = vpop.permute.xlu0 %1699  ;;  %v1746_v43 = vpop.permute.xlu1 %1745 }
 0x14c   : > { %1538 = vmatmul.mubr.bf16.gmra.mxu0 %v1221_v57  ;;  %vm1766_vm9 = vcmp.eq.s32.totalorder %v1746_v43, 1 }
 0x14f   : > { %v3011_v0 = vpop.permute.xlu0 %1709 }
 0x151   : > { %1603 = vmatmul.mubr.bf16.gmra.mxu1 %v1223_v58 }
 0x153   : > { %v1743_v13 = vpop.permute.xlu0 %1742 }
 0x154   : > { %vm1765_vm8 = vcmp.eq.s32.totalorder %v1743_v13, 1 }
 0x157   : > { %v1749_v31 = vpop.permute.xlu0 %1748 }
 0x158   : > { %vm1767_vm10 = vcmp.eq.s32.totalorder %v1749_v31, 1 }
 0x1f4   : > { %v2103_v44 = vpop.f32.mrf.mxu0 }
 0x1f6   : > { %v2104_v15 = vpop.f32.mrf.mxu0 }
 0x1f7   : > { %v2105_v19 = vadd.f32 %v2104_v15, %v2103_v44 }
 0x1f8   : > { %v2106_v18 = vpop.f32.mrf.mxu0 }
 0x1f9   : > { %v2143_v2 = vpop.f32.mrf.mxu1 }
 0x1fa   : > { %v2107_v45 = vpop.f32.mrf.mxu0 }
 0x1fb   : > { %v2144_v8 = vpop.f32.mrf.mxu1  ;;  %v2108_v22 = vadd.f32 %v2107_v45, %v2106_v18 }
 0x1fc   : > { %v2145_v4 = vadd.f32 %v2144_v8, %v2143_v2  ;;  %v2109_v46 = vpop.f32.mrf.mxu0  ;;  %v1729_v8 = vld [vmem:[%s2505_s14 + $0x20] sm:$0xff] }
 0x1fd   : > { %v2146_v14 = vpop.f32.mrf.mxu1 }
 0x1fe   : > { %v1581_v33 = vadd.f32 %v2145_v4, %v2105_v19  ;;  %v2110_v11 = vpop.f32.mrf.mxu0 }
 0x1ff   : > { %v2147_v53 = vpop.f32.mrf.mxu1  ;;  %v2111_v37 = vadd.f32 %v2110_v11, %v2109_v46  ;;  %v1755_v46 = vpop.permute.xlu0 %1754 }
 0x200   : > { %v1645_v35 = vadd.f32 %v3016_v27, %v1581_v33  ;;  %v2148_v56 = vadd.f32 %v2147_v53, %v2146_v14  ;;  %v2112_v25 = vpop.f32.mrf.mxu0  ;;  %vm1769_vm12 = vcmp.eq.s32.totalorder %v1755_v46, 1 }
 0x201   : > { %v2149_v23 = vpop.f32.mrf.mxu1 }
 0x202   : > { %v1717_v61 = vmul.f32 %v1680_v10, %v1645_v35  ;;  %v1584_v34 = vadd.f32 %v2148_v56, %v2108_v22  ;;  %v2113_v52 = vpop.f32.mrf.mxu0  ;;  %v1752_v10 = vpop.permute.xlu1 %1751 }
 0x203   : > { %v2150_v12 = vpop.f32.mrf.mxu1  ;;  %v2114_v28 = vadd.f32 %v2113_v52, %v2112_v25  ;;  %vm1768_vm11 = vcmp.eq.s32.totalorder %v1752_v10, 1 }
 0x204   : > { %v1773_v26 = vsel %vm1765_vm8, %v1717_v61, %v1725_v9  ;;  %v1646_v16 = vadd.f32 %v3016_v27, %v1584_v34  ;;  %v2151_v17 = vadd.f32 %v2150_v12, %v2149_v23  ;;  %v2115_v54 = vpop.f32.mrf.mxu0  ;;  %v1730_v9 = vld [vmem:[%s2505_s14 + $0x28] sm:$0xff]  ;;  %v1761_v12 = vpop.permute.xlu0 %1760 }
 0x205   : > { %1781 = vst [vmem:[%s3026_s20] sm:$0xff] %v1773_v26  ;;  %v2152_v42 = vpop.f32.mrf.mxu1  ;;  %vm1771_vm14 = vcmp.eq.s32.totalorder %v1761_v12, 1 }
 0x206   : > { %v1718_v36 = vmul.f32 %v1685_v62, %v1646_v16  ;;  %v1589_v59 = vadd.f32 %v2151_v17, %v2111_v37  ;;  %v2116_v20 = vpop.f32.mrf.mxu0  ;;  %v1758_v25 = vpop.permute.xlu1 %1757  ;;  %v1731_v17 = vld [vmem:[%s2505_s14 + $0x30] sm:$0xff] }
 0x207   : > { %v2153_v5 = vpop.f32.mrf.mxu1  ;;  %v2117_v30 = vadd.f32 %v2116_v20, %v2115_v54  ;;  %vm1770_vm13 = vcmp.eq.s32.totalorder %v1758_v25, 1 }
 0x208   : > { %v1774_v49 = vsel %vm1766_vm9, %v1718_v36, %v1726_v51  ;;  %v1647_v47 = vadd.f32 %v3016_v27, %v1589_v59  ;;  %v2154_v21 = vadd.f32 %v2153_v5, %v2152_v42  ;;  %v2118_v63 = vpop.f32.mrf.mxu0  ;;  %v1732_v36 = vld [vmem:[%s2505_s14 + $0x38] sm:$0xff] }
 0x209   : > { %1782 = vst [vmem:[%s3026_s20 + $0x8] sm:$0xff] %v1774_v49  ;;  %v2155_v55 = vpop.f32.mrf.mxu1 }
 0x20a   : > { %v1719_v1 = vmul.f32 %v1690_v39, %v1647_v47  ;;  %v1592_v6 = vadd.f32 %v2154_v21, %v2114_v28  ;;  %v2119_v50 = vpop.f32.mrf.mxu0  ;;  %v1764_v54 = vpop.permute.xlu1 %1763 }
 0x20b   : > { %v2156_v38 = vpop.f32.mrf.mxu1  ;;  %v2120_v39 = vadd.f32 %v2119_v50, %v2118_v63  ;;  %vm1772_vm15 = vcmp.eq.s32.totalorder %v1764_v54, 1 }
 0x20c   : > { %v1775_v24 = vsel %vm1767_vm10, %v1719_v1, %v1727_v3  ;;  %v1648_v57 = vadd.f32 %v3016_v27, %v1592_v6  ;;  %v2157_v41 = vadd.f32 %v2156_v38, %v2155_v55  ;;  %v2121_v58 = vpop.f32.mrf.mxu0 }
 0x20d   : > { %1783 = vst [vmem:[%s3026_s20 + $0x10] sm:$0xff] %v1775_v24  ;;  %v2158_v60 = vpop.f32.mrf.mxu1 }
 0x20e   : > { %v1720_v62 = vmul.f32 %v3005_v29, %v1648_v57  ;;  %v1597_v44 = vadd.f32 %v2157_v41, %v2117_v30  ;;  %v2122_v18 = vpop.f32.mrf.mxu0 }
 0x20f   : > { %v2159_v15 = vpop.f32.mrf.mxu1  ;;  %v2123_v29 = vadd.f32 %v2122_v18, %v2121_v58 }
 0x210   : > { %v1776_v2 = vsel %vm1768_vm11, %v1720_v62, %v1728_v48  ;;  %v1649_v19 = vadd.f32 %v3016_v27, %v1597_v44  ;;  %v2160_v45 = vadd.f32 %v2159_v15, %v2158_v60  ;;  %v2124_v14 = vpop.f32.mrf.mxu0 }
 0x211   : > { %1784 = vst [vmem:[%s3026_s20 + $0x18] sm:$0xff] %v1776_v2  ;;  %v2161_v4 = vpop.f32.mrf.mxu1 }
 0x212   : > { %v1721_v33 = vmul.f32 %v3007_v7, %v1649_v19  ;;  %v1600_v22 = vadd.f32 %v2160_v45, %v2120_v39  ;;  %v2125_v11 = vpop.f32.mrf.mxu0 }
 0x213   : > { %v2162_v53 = vpop.f32.mrf.mxu1  ;;  %v2126_v7 = vadd.f32 %v2125_v11, %v2124_v14 }
 0x214   : > { %v1777_v13 = vsel %vm1769_vm12, %v1721_v33, %v1729_v8  ;;  %v1650_v35 = vadd.f32 %v3016_v27, %v1600_v22  ;;  %v2163_v56 = vadd.f32 %v2162_v53, %v2161_v4 }
 0x215   : > { %1785 = vst [vmem:[%s3026_s20 + $0x20] sm:$0xff] %v1777_v13  ;;  %v2164_v23 = vpop.f32.mrf.mxu1 }
 0x216   : > { %v1722_v61 = vmul.f32 %v3009_v40, %v1650_v35  ;;  %v1605_v34 = vadd.f32 %v2163_v56, %v2123_v29 }
 0x217   : > { %v2165_v37 = vpop.f32.mrf.mxu1 }
 0x218   : > { %v1778_v52 = vsel %vm1770_vm13, %v1722_v61, %v1730_v9  ;;  %v1651_v26 = vadd.f32 %v3016_v27, %v1605_v34  ;;  %v2166_v16 = vadd.f32 %v2165_v37, %v2164_v23 }
 0x219   : > { %1786 = vst [vmem:[%s3026_s20 + $0x28] sm:$0xff] %v1778_v52 }
 0x21a   : > { %v1723_v51 = vmul.f32 %v3011_v0, %v1651_v26  ;;  %v1608_v42 = vadd.f32 %v2166_v16, %v2126_v7 }
 0x21c   : > { %v1779_v40 = vsel %vm1771_vm14, %v1723_v51, %v1731_v17  ;;  %v1652_v43 = vadd.f32 %v3016_v27, %v1608_v42 }
 0x21d   : > { %1787 = vst [vmem:[%s3026_s20 + $0x30] sm:$0xff] %v1779_v40 }
 0x21e   : > { %v1724_v59 = vmul.f32 %v3018_v32, %v1652_v43 }
 0x220   : > { %v1780_v28 = vsel %vm1772_vm15, %v1724_v59, %v1732_v36 }
 0x221   : > { %1788 = vst [vmem:[%s3026_s20 + $0x38] sm:$0xff] %v1780_v28 }
 0x222 PF: > { %s17_s26 = sadd.s32 1, %s2364_s26   ;;  %s3080_s24 = smov %s2360_s25 }
 0x223   : > { %p14_p5 = scmp.ge.s32.totalorder %s17_s26, 4   ;;  %s3081_s25 = smov %s3083_s27 }
 0x225   :  { %16 = sbr.rel (!%p14_p5) target bundleno = 2 (0x2), region = 101 }

</bundles_post_ra>
